<compile_context>
chip_gen: v7x
topology: tpu7x:2x2x1
jax: 0.10.0
libtpu: 0.0.40
codegen_flags: <defaults>
</compile_context>

<pallas_src>
import functools

import jax
import jax.numpy as jnp
from jax.experimental import pallas as pl
from jax.experimental.pallas import tpu as pltpu

EPS = 1e-5  # nn.BatchNorm2d default


def resblk_kernel(x_ref, b_ref, gb_ref, o_ref, *, num_channels, inv_count):
    # x_ref : (H, L)        f32 activations, L = N*W*C, lane index = n*W*C + w*C + c
    # b_ref : (2, 3*L, L)   bf16 stacked banded conv weights (layer, [dy0;dy1;dy2], lanes)
    # gb_ref: (4, L)        f32 rows = (gamma1, beta1, gamma2, beta2), tiled per lane
    # o_ref : (H, L)        f32
    h_dim, lanes = x_ref.shape
    x = x_ref[...]
    gb = gb_ref[...]
    row = jax.lax.broadcasted_iota(jnp.int32, (h_dim, lanes), 0)

    def conv3x3(z, w_bf16):
        # +-1 row shifts along H (sublane XLU rotations) + boundary masks give
        # the zero "same" padding; the 1x3-along-W conv and the channel
        # contraction are folded into the banded weight, so the whole 3x3 conv
        # is a single MXU matmul with K = 3 * lanes.
        z_prev = jnp.where(row == 0, 0.0, pltpu.roll(z, 1, axis=0))            # row h <- z[h-1]
        z_next = jnp.where(row == h_dim - 1, 0.0, pltpu.roll(z, h_dim - 1, axis=0))  # row h <- z[h+1]
        zc = jnp.concatenate([z_prev, z, z_next], axis=1).astype(jnp.bfloat16)  # (H, 3L)
        return jnp.dot(zc, w_bf16, preferred_element_type=jnp.float32)          # f32 accumulation

    def batchnorm(y, gamma, beta):
        # Training-mode BN (biased variance), single-pass stats kept in f32.
        s = jnp.sum(y, axis=0, keepdims=True)            # (1, L) sublane reduce
        ss = jnp.sum(y * y, axis=0, keepdims=True)       # (1, L)
        # Per-channel all-reduce over the lanes sharing a channel: butterfly of
        # XLU lane rotations by multiples of C (requires N*W groups = power of 2).
        d = num_channels
        while d < lanes:
            s = s + pltpu.roll(s, d, axis=1)
            ss = ss + pltpu.roll(ss, d, axis=1)
            d *= 2
        mu = s * inv_count
        var = jnp.maximum(ss * inv_count - mu * mu, 0.0)  # guard cancellation
        scale = gamma * jax.lax.rsqrt(var + EPS)          # folded affine:
        shift = beta - mu * scale                         # y*scale + shift
        return y * scale + shift

    h1 = conv3x3(x, b_ref[0])
    h1 = jnp.maximum(batchnorm(h1, gb[0:1, :], gb[1:2, :]), 0.0)
    y2 = conv3x3(h1, b_ref[1])
    y2 = batchnorm(y2, gb[2:3, :], gb[3:4, :])
    # Identity residual (stride=1, ichs == chs, downsample=None) + final ReLU.
    o_ref[...] = jnp.maximum(y2 + x, 0.0).astype(o_ref.dtype)


def _banded_w(w_oihw, width):
    """PyTorch (Cout, Cin, 3, 3) conv weight -> (3, W*Cin, W*Cout) banded slabs.

    B[dy, k*Cin+ci, j*Cout+co] = w[co, ci, dy, k-j+1] if |k-j| <= 1 else 0, so
    (rows, W*Cin) @ B[dy] applies the 1x3 conv along W (incl. zero padding) of
    kernel row dy to every (w, channel) lane pair at once.
    """
    w = jnp.asarray(w_oihw, jnp.float32)
    wt = jnp.transpose(w, (2, 3, 1, 0))                  # (ky, kx, Cin, Cout)
    cin, cout = wt.shape[2], wt.shape[3]
    k = jnp.arange(width)[:, None]
    j = jnp.arange(width)[None, :]
    dx = k - j + 1                                       # (W, W)
    valid = (dx >= 0) & (dx <= 2)
    taps = wt[:, jnp.clip(dx, 0, 2)]                     # (3, W, W, Cin, Cout)
    taps = jnp.where(valid[None, :, :, None, None], taps, 0.0)
    return jnp.transpose(taps, (0, 1, 3, 2, 4)).reshape(3, width * cin, width * cout)


def _stacked_conv_weight(w_oihw, n, width):
    """-> (3*N*W*Cin, N*W*Cout): vertically stacked [dy=0; dy=1; dy=2] banded
    blocks, each block-diagonal over the batch (lanes are (n, w, c) and the
    conv never mixes batch elements)."""
    bd = _banded_w(w_oihw, width)                        # (3, W*Cin, W*Cout)
    eye_n = jnp.eye(n, dtype=jnp.float32)
    bd = jax.vmap(lambda blk: jnp.kron(eye_n, blk))(bd)  # (3, N*W*Cin, N*W*Cout)
    return bd.reshape(3 * bd.shape[1], bd.shape[2])


def prepare_resblk_params(params, n, c, h, w):
    """One-time, weight-only prep (hoisted off the per-call forward path)."""
    groups = n * w
    assert groups & (groups - 1) == 0, "butterfly BN reduce needs power-of-two N*W"
    # bf16 MXU operands (f32 accumulation happens in the kernel).
    b_stack = jnp.stack([_stacked_conv_weight(params["w1"], n, w),
                         _stacked_conv_weight(params["w2"], n, w)]).astype(jnp.bfloat16)
    gb = jnp.stack([jnp.tile(params[k].astype(jnp.float32), n * w)
                    for k in ("g1", "b1", "g2", "b2")])  # (4, N*W*C)
    return {"b": b_stack, "gb": gb}


def resblk_forward(x_nchw, prepared):
    """x_nchw: (N, C, H, W) float32, PyTorch layout. Returns (N, C, H, W)."""
    n, c, h, w = x_nchw.shape
    lanes = n * w * c
    # Activation layout: (H, N*W*C); lanes = (batch, col, channel) -> lane-dense
    # (exactly 128 wide for this config), rows = image row (the conv's +-1 axis).
    x2 = jnp.transpose(x_nchw, (2, 0, 3, 1)).reshape(h, lanes).astype(jnp.float32)

    out2 = pl.pallas_call(
        functools.partial(resblk_kernel, num_channels=c,
                          inv_count=1.0 / float(n * h * w)),
        out_shape=jax.ShapeDtypeStruct((h, lanes), jnp.float32),
        in_specs=[pl.BlockSpec(memory_space=pltpu.MemorySpace.VMEM)] * 3,
        out_specs=pl.BlockSpec(memory_space=pltpu.MemorySpace.VMEM),
    )(x2, prepared["b"], prepared["gb"])

    return jnp.transpose(out2.reshape(h, n, w, c), (1, 3, 0, 2))  # -> NCHW


def resblk_reference(x_nchw, params):
    """Pure-JAX reference matching PyTorch ResBlk.forward (training-mode BN)."""
    dn = ("NCHW", "OIHW", "NCHW")

    def bn(z, g, b):
        mu = z.mean(axis=(0, 2, 3), keepdims=True)
        var = ((z - mu) ** 2).mean(axis=(0, 2, 3), keepdims=True)
        return ((z - mu) * jax.lax.rsqrt(var + EPS)
                * g.reshape(1, -1, 1, 1) + b.reshape(1, -1, 1, 1))

    h = jax.lax.conv_general_dilated(x_nchw, params["w1"], (1, 1), "SAME",
                                     dimension_numbers=dn)
    h = jnp.maximum(bn(h, params["g1"], params["b1"]), 0.0)
    h = jax.lax.conv_general_dilated(h, params["w2"], (1, 1), "SAME",
                                     dimension_numbers=dn)
    h = bn(h, params["g2"], params["b2"])
    return jnp.maximum(h + x_nchw, 0.0)


if __name__ == "__main__":
    # Small shapes: batch=2, channels=4 (ichs == chs, stride=1, no downsample),
    # spatial 16x16.  N*W*C = 128 -> exactly one lane-width.
    N, C, H, W = 2, 4, 16, 16
    key = jax.random.PRNGKey(0)
    kx, kw1, kw2, kg1, kb1, kg2, kb2 = jax.random.split(key, 7)

    x = jax.random.normal(kx, (N, C, H, W), jnp.float32)
    params = {
        "w1": 0.1 * jax.random.normal(kw1, (C, C, 3, 3), jnp.float32),
        "w2": 0.1 * jax.random.normal(kw2, (C, C, 3, 3), jnp.float32),
        "g1": 1.0 + 0.1 * jax.random.normal(kg1, (C,), jnp.float32),
        "b1": 0.1 * jax.random.normal(kb1, (C,), jnp.float32),
        "g2": 1.0 + 0.1 * jax.random.normal(kg2, (C,), jnp.float32),
        "b2": 0.1 * jax.random.normal(kb2, (C,), jnp.float32),
    }

    prepared = prepare_resblk_params(params, N, C, H, W)  # weight prep, once
    out = jax.block_until_ready(resblk_forward(x, prepared))
    ref = jax.block_until_ready(resblk_reference(x, params))

    assert out.shape == (N, C, H, W)
    # Tolerance reflects bf16 MXU operands (~2^-8 relative input precision,
    # two cascaded convs); accumulation and BatchNorm statistics stay in f32.
    max_diff = jnp.max(jnp.abs(out - ref))
    assert jnp.allclose(out, ref, rtol=3e-2, atol=3e-2), \
        f"max abs diff {max_diff}"
    print("KERNEL_OK")
</pallas_src>

<mosaic_0001>
module attributes {stable_mosaic.version = 11 : i64} {
  func.func @resblk_kernel(%arg0: memref<16x128xf32, #tpu.memory_space<vmem>>, %arg1: memref<2x384x128xbf16, #tpu.memory_space<vmem>>, %arg2: memref<4x128xf32, #tpu.memory_space<vmem>>, %arg3: memref<16x128xf32, #tpu.memory_space<vmem>>) attributes {dimension_semantics = [], scalar_prefetch = 0 : i64, scratch_operands = 0 : i64, tpu.core_type = #tpu.core_type<tc>} {
    %c0 = arith.constant 0 : index
    %c0_0 = arith.constant 0 : index
    %0 = vector.load %arg0[%c0, %c0_0] : memref<16x128xf32, #tpu.memory_space<vmem>>, vector<16x128xf32>
    %c0_1 = arith.constant 0 : index
    %c0_2 = arith.constant 0 : index
    %1 = vector.load %arg2[%c0_1, %c0_2] : memref<4x128xf32, #tpu.memory_space<vmem>>, vector<4x128xf32>
    %2 = tpu.iota {dimensions = array<i32: 0>} : vector<16x128xi32>
    %c0_3 = arith.constant 0 : index
    %c0_4 = arith.constant 0 : index
    %c0_5 = arith.constant 0 : index
    %3 = vector.load %arg1[%c0_3, %c0_4, %c0_5] : memref<2x384x128xbf16, #tpu.memory_space<vmem>>, vector<1x384x128xbf16>
    %4 = vector.shape_cast %3 : vector<1x384x128xbf16> to vector<384x128xbf16>
    %c0_i32 = arith.constant 0 : i32
    %5 = vector.broadcast %c0_i32 : i32 to vector<16x128xi32>
    %6 = arith.cmpi eq, %2, %5 : vector<16x128xi32>
    %c1_i32 = arith.constant 1 : i32
    %7 = tpu.dynamic_rotate %0 by %c1_i32 dim 0 : vector<16x128xf32>, i32 -> vector<16x128xf32>
    %cst = arith.constant 0.000000e+00 : f32
    %8 = vector.broadcast %cst : f32 to vector<16x128xf32>
    %9 = arith.select %6, %8, %7 : vector<16x128xi1>, vector<16x128xf32>
    %c15_i32 = arith.constant 15 : i32
    %10 = vector.broadcast %c15_i32 : i32 to vector<16x128xi32>
    %11 = arith.cmpi eq, %2, %10 : vector<16x128xi32>
    %c15_i32_6 = arith.constant 15 : i32
    %12 = tpu.dynamic_rotate %0 by %c15_i32_6 dim 0 : vector<16x128xf32>, i32 -> vector<16x128xf32>
    %cst_7 = arith.constant 0.000000e+00 : f32
    %13 = vector.broadcast %cst_7 : f32 to vector<16x128xf32>
    %14 = arith.select %11, %13, %12 : vector<16x128xi1>, vector<16x128xf32>
    %15 = tpu.concatenate %9, %0, %14 in 1 : vector<16x128xf32>, vector<16x128xf32>, vector<16x128xf32> -> vector<16x384xf32>
    %16 = arith.truncf %15 : vector<16x384xf32> to vector<16x384xbf16>
    %cst_8 = arith.constant dense<0.000000e+00> : vector<16x128xf32>
    %17 = tpu.matmul %16, %4, %cst_8 {dimension_numbers = #tpu.dot_dimension_numbers<[1], [0], [0], [1], [0, 0, 1, 1], [], []>} : vector<16x384xbf16>, vector<384x128xbf16>, vector<16x128xf32> -> vector<16x128xf32>
    %18 = vector.extract_strided_slice %1 {offsets = [0, 0], sizes = [1, 128], strides = [1, 1]} : vector<4x128xf32> to vector<1x128xf32>
    %19 = vector.extract_strided_slice %1 {offsets = [1, 0], sizes = [1, 128], strides = [1, 1]} : vector<4x128xf32> to vector<1x128xf32>
    %cst_9 = arith.constant dense<0.000000e+00> : vector<128xf32>
    %20 = vector.multi_reduction <add>, %17, %cst_9 [0] : vector<16x128xf32> to vector<128xf32>
    %21 = vector.shape_cast %20 : vector<128xf32> to vector<1x128xf32>
    %22 = arith.mulf %17, %17 : vector<16x128xf32>
    %cst_10 = arith.constant dense<0.000000e+00> : vector<128xf32>
    %23 = vector.multi_reduction <add>, %22, %cst_10 [0] : vector<16x128xf32> to vector<128xf32>
    %24 = vector.shape_cast %23 : vector<128xf32> to vector<1x128xf32>
    %c4_i32 = arith.constant 4 : i32
    %25 = tpu.dynamic_rotate %21 by %c4_i32 dim 1 : vector<1x128xf32>, i32 -> vector<1x128xf32>
    %26 = arith.addf %21, %25 : vector<1x128xf32>
    %c4_i32_11 = arith.constant 4 : i32
    %27 = tpu.dynamic_rotate %24 by %c4_i32_11 dim 1 : vector<1x128xf32>, i32 -> vector<1x128xf32>
    %28 = arith.addf %24, %27 : vector<1x128xf32>
    %c8_i32 = arith.constant 8 : i32
    %29 = tpu.dynamic_rotate %26 by %c8_i32 dim 1 : vector<1x128xf32>, i32 -> vector<1x128xf32>
    %30 = arith.addf %26, %29 : vector<1x128xf32>
    %c8_i32_12 = arith.constant 8 : i32
    %31 = tpu.dynamic_rotate %28 by %c8_i32_12 dim 1 : vector<1x128xf32>, i32 -> vector<1x128xf32>
    %32 = arith.addf %28, %31 : vector<1x128xf32>
    %c16_i32 = arith.constant 16 : i32
    %33 = tpu.dynamic_rotate %30 by %c16_i32 dim 1 : vector<1x128xf32>, i32 -> vector<1x128xf32>
    %34 = arith.addf %30, %33 : vector<1x128xf32>
    %c16_i32_13 = arith.constant 16 : i32
    %35 = tpu.dynamic_rotate %32 by %c16_i32_13 dim 1 : vector<1x128xf32>, i32 -> vector<1x128xf32>
    %36 = arith.addf %32, %35 : vector<1x128xf32>
    %c32_i32 = arith.constant 32 : i32
    %37 = tpu.dynamic_rotate %34 by %c32_i32 dim 1 : vector<1x128xf32>, i32 -> vector<1x128xf32>
    %38 = arith.addf %34, %37 : vector<1x128xf32>
    %c32_i32_14 = arith.constant 32 : i32
    %39 = tpu.dynamic_rotate %36 by %c32_i32_14 dim 1 : vector<1x128xf32>, i32 -> vector<1x128xf32>
    %40 = arith.addf %36, %39 : vector<1x128xf32>
    %c64_i32 = arith.constant 64 : i32
    %41 = tpu.dynamic_rotate %38 by %c64_i32 dim 1 : vector<1x128xf32>, i32 -> vector<1x128xf32>
    %42 = arith.addf %38, %41 : vector<1x128xf32>
    %c64_i32_15 = arith.constant 64 : i32
    %43 = tpu.dynamic_rotate %40 by %c64_i32_15 dim 1 : vector<1x128xf32>, i32 -> vector<1x128xf32>
    %44 = arith.addf %40, %43 : vector<1x128xf32>
    %cst_16 = arith.constant 0.001953125 : f32
    %45 = vector.broadcast %cst_16 : f32 to vector<1x128xf32>
    %46 = arith.mulf %42, %45 : vector<1x128xf32>
    %cst_17 = arith.constant 0.001953125 : f32
    %47 = vector.broadcast %cst_17 : f32 to vector<1x128xf32>
    %48 = arith.mulf %44, %47 : vector<1x128xf32>
    %49 = arith.mulf %46, %46 : vector<1x128xf32>
    %50 = arith.subf %48, %49 : vector<1x128xf32>
    %cst_18 = arith.constant 0.000000e+00 : f32
    %51 = vector.broadcast %cst_18 : f32 to vector<1x128xf32>
    %52 = arith.maximumf %50, %51 : vector<1x128xf32>
    %cst_19 = arith.constant 9.99999974E-6 : f32
    %53 = vector.broadcast %cst_19 : f32 to vector<1x128xf32>
    %54 = arith.addf %52, %53 : vector<1x128xf32>
    %55 = math.rsqrt %54 : vector<1x128xf32>
    %56 = arith.mulf %18, %55 : vector<1x128xf32>
    %57 = arith.mulf %46, %56 : vector<1x128xf32>
    %58 = arith.subf %19, %57 : vector<1x128xf32>
    %59 = vector.broadcast %56 : vector<1x128xf32> to vector<16x128xf32>
    %60 = arith.mulf %17, %59 : vector<16x128xf32>
    %61 = vector.broadcast %58 : vector<1x128xf32> to vector<16x128xf32>
    %62 = arith.addf %60, %61 : vector<16x128xf32>
    %cst_20 = arith.constant 0.000000e+00 : f32
    %63 = vector.broadcast %cst_20 : f32 to vector<16x128xf32>
    %64 = arith.maximumf %62, %63 : vector<16x128xf32>
    %c1 = arith.constant 1 : index
    %c0_21 = arith.constant 0 : index
    %c0_22 = arith.constant 0 : index
    %65 = vector.load %arg1[%c1, %c0_21, %c0_22] : memref<2x384x128xbf16, #tpu.memory_space<vmem>>, vector<1x384x128xbf16>
    %66 = vector.shape_cast %65 : vector<1x384x128xbf16> to vector<384x128xbf16>
    %c0_i32_23 = arith.constant 0 : i32
    %67 = vector.broadcast %c0_i32_23 : i32 to vector<16x128xi32>
    %68 = arith.cmpi eq, %2, %67 : vector<16x128xi32>
    %c1_i32_24 = arith.constant 1 : i32
    %69 = tpu.dynamic_rotate %64 by %c1_i32_24 dim 0 : vector<16x128xf32>, i32 -> vector<16x128xf32>
    %cst_25 = arith.constant 0.000000e+00 : f32
    %70 = vector.broadcast %cst_25 : f32 to vector<16x128xf32>
    %71 = arith.select %68, %70, %69 : vector<16x128xi1>, vector<16x128xf32>
    %c15_i32_26 = arith.constant 15 : i32
    %72 = vector.broadcast %c15_i32_26 : i32 to vector<16x128xi32>
    %73 = arith.cmpi eq, %2, %72 : vector<16x128xi32>
    %c15_i32_27 = arith.constant 15 : i32
    %74 = tpu.dynamic_rotate %64 by %c15_i32_27 dim 0 : vector<16x128xf32>, i32 -> vector<16x128xf32>
    %cst_28 = arith.constant 0.000000e+00 : f32
    %75 = vector.broadcast %cst_28 : f32 to vector<16x128xf32>
    %76 = arith.select %73, %75, %74 : vector<16x128xi1>, vector<16x128xf32>
    %77 = tpu.concatenate %71, %64, %76 in 1 : vector<16x128xf32>, vector<16x128xf32>, vector<16x128xf32> -> vector<16x384xf32>
    %78 = arith.truncf %77 : vector<16x384xf32> to vector<16x384xbf16>
    %cst_29 = arith.constant dense<0.000000e+00> : vector<16x128xf32>
    %79 = tpu.matmul %78, %66, %cst_29 {dimension_numbers = #tpu.dot_dimension_numbers<[1], [0], [0], [1], [0, 0, 1, 1], [], []>} : vector<16x384xbf16>, vector<384x128xbf16>, vector<16x128xf32> -> vector<16x128xf32>
    %80 = vector.extract_strided_slice %1 {offsets = [2, 0], sizes = [1, 128], strides = [1, 1]} : vector<4x128xf32> to vector<1x128xf32>
    %81 = vector.extract_strided_slice %1 {offsets = [3, 0], sizes = [1, 128], strides = [1, 1]} : vector<4x128xf32> to vector<1x128xf32>
    %cst_30 = arith.constant dense<0.000000e+00> : vector<128xf32>
    %82 = vector.multi_reduction <add>, %79, %cst_30 [0] : vector<16x128xf32> to vector<128xf32>
    %83 = vector.shape_cast %82 : vector<128xf32> to vector<1x128xf32>
    %84 = arith.mulf %79, %79 : vector<16x128xf32>
    %cst_31 = arith.constant dense<0.000000e+00> : vector<128xf32>
    %85 = vector.multi_reduction <add>, %84, %cst_31 [0] : vector<16x128xf32> to vector<128xf32>
    %86 = vector.shape_cast %85 : vector<128xf32> to vector<1x128xf32>
    %c4_i32_32 = arith.constant 4 : i32
    %87 = tpu.dynamic_rotate %83 by %c4_i32_32 dim 1 : vector<1x128xf32>, i32 -> vector<1x128xf32>
    %88 = arith.addf %83, %87 : vector<1x128xf32>
    %c4_i32_33 = arith.constant 4 : i32
    %89 = tpu.dynamic_rotate %86 by %c4_i32_33 dim 1 : vector<1x128xf32>, i32 -> vector<1x128xf32>
    %90 = arith.addf %86, %89 : vector<1x128xf32>
    %c8_i32_34 = arith.constant 8 : i32
    %91 = tpu.dynamic_rotate %88 by %c8_i32_34 dim 1 : vector<1x128xf32>, i32 -> vector<1x128xf32>
    %92 = arith.addf %88, %91 : vector<1x128xf32>
    %c8_i32_35 = arith.constant 8 : i32
    %93 = tpu.dynamic_rotate %90 by %c8_i32_35 dim 1 : vector<1x128xf32>, i32 -> vector<1x128xf32>
    %94 = arith.addf %90, %93 : vector<1x128xf32>
    %c16_i32_36 = arith.constant 16 : i32
    %95 = tpu.dynamic_rotate %92 by %c16_i32_36 dim 1 : vector<1x128xf32>, i32 -> vector<1x128xf32>
    %96 = arith.addf %92, %95 : vector<1x128xf32>
    %c16_i32_37 = arith.constant 16 : i32
    %97 = tpu.dynamic_rotate %94 by %c16_i32_37 dim 1 : vector<1x128xf32>, i32 -> vector<1x128xf32>
    %98 = arith.addf %94, %97 : vector<1x128xf32>
    %c32_i32_38 = arith.constant 32 : i32
    %99 = tpu.dynamic_rotate %96 by %c32_i32_38 dim 1 : vector<1x128xf32>, i32 -> vector<1x128xf32>
    %100 = arith.addf %96, %99 : vector<1x128xf32>
    %c32_i32_39 = arith.constant 32 : i32
    %101 = tpu.dynamic_rotate %98 by %c32_i32_39 dim 1 : vector<1x128xf32>, i32 -> vector<1x128xf32>
    %102 = arith.addf %98, %101 : vector<1x128xf32>
    %c64_i32_40 = arith.constant 64 : i32
    %103 = tpu.dynamic_rotate %100 by %c64_i32_40 dim 1 : vector<1x128xf32>, i32 -> vector<1x128xf32>
    %104 = arith.addf %100, %103 : vector<1x128xf32>
    %c64_i32_41 = arith.constant 64 : i32
    %105 = tpu.dynamic_rotate %102 by %c64_i32_41 dim 1 : vector<1x128xf32>, i32 -> vector<1x128xf32>
    %106 = arith.addf %102, %105 : vector<1x128xf32>
    %cst_42 = arith.constant 0.001953125 : f32
    %107 = vector.broadcast %cst_42 : f32 to vector<1x128xf32>
    %108 = arith.mulf %104, %107 : vector<1x128xf32>
    %cst_43 = arith.constant 0.001953125 : f32
    %109 = vector.broadcast %cst_43 : f32 to vector<1x128xf32>
    %110 = arith.mulf %106, %109 : vector<1x128xf32>
    %111 = arith.mulf %108, %108 : vector<1x128xf32>
    %112 = arith.subf %110, %111 : vector<1x128xf32>
    %cst_44 = arith.constant 0.000000e+00 : f32
    %113 = vector.broadcast %cst_44 : f32 to vector<1x128xf32>
    %114 = arith.maximumf %112, %113 : vector<1x128xf32>
    %cst_45 = arith.constant 9.99999974E-6 : f32
    %115 = vector.broadcast %cst_45 : f32 to vector<1x128xf32>
    %116 = arith.addf %114, %115 : vector<1x128xf32>
    %117 = math.rsqrt %116 : vector<1x128xf32>
    %118 = arith.mulf %80, %117 : vector<1x128xf32>
    %119 = arith.mulf %108, %118 : vector<1x128xf32>
    %120 = arith.subf %81, %119 : vector<1x128xf32>
    %121 = vector.broadcast %118 : vector<1x128xf32> to vector<16x128xf32>
    %122 = arith.mulf %79, %121 : vector<16x128xf32>
    %123 = vector.broadcast %120 : vector<1x128xf32> to vector<16x128xf32>
    %124 = arith.addf %122, %123 : vector<16x128xf32>
    %125 = arith.addf %124, %0 : vector<16x128xf32>
    %cst_46 = arith.constant 0.000000e+00 : f32
    %126 = vector.broadcast %cst_46 : f32 to vector<16x128xf32>
    %127 = arith.maximumf %125, %126 : vector<16x128xf32>
    %c0_47 = arith.constant 0 : index
    %c0_48 = arith.constant 0 : index
    %128 = vector.load %arg3[%c0_47, %c0_48] : memref<16x128xf32, #tpu.memory_space<vmem>>, vector<16x128xf32>
    tpu.vector_store %arg3[%c0_47, %c0_48], %127 {strides = array<i32>} : memref<16x128xf32, #tpu.memory_space<vmem>>, vector<16x128xf32>,
    return
  }
}

</mosaic_0001>

<bundles_post_ra>
// kernel: tpu_custom_call.1
= control target key start
LH: loop header
LB: loop body
LE: loop exit
PB: predicated region body
PF: predicated region fallthrough
CT: control target
= control target key end

     0   :  { %8 = vsyncpa [#allocation3], 0  ;;  %s1320_s0 = inlined_call_operand.hbm [shape: f32[16,128], index: 0, kind: input, shape index: {}]   ;;  %s1321_s1 = inlined_call_operand.hbm [shape: bf16[2,384,128], index: 1, kind: input, shape index: {}]   ;;  %s1322_s2 = inlined_call_operand.vmem [shape: f32[4,128], index: 2, kind: input, shape index: {}]   ;;  %s1323_s3 = inlined_call_operand.hbm [shape: f32[16,128], index: 3, kind: output, shape index: {}]  }
   0x1   :  { %9 = vsyncpa [#allocation6], 0 }
   0x2   :  { %10 = vsyncpa [#allocation4], 0  ;;  %s1113_s12 = smov [#allocation2]   ;;  %s1041_s16 = scalar_lea.hbm %s1320_s0, 256 }
   0x3   :  { %s16_s13 = sshll.u32 %s1113_s12, 4  ;;  %p1042_p0 = scmp.ne.s32.totalorder %s1320_s0, %s1041_s16  ;;  %s17_s13 = int_to_ptr.vmem [resolvable:$true] %s16_s13 }
   0x4   :  { %p1045_p1 = scmp.lt.u32.totalorder %s1041_s16, %s1320_s0 }
   0x6   :  { %p1047_p2 = pnand %p1045_p1, %p1042_p0 }
   0x8   :  { %1050 = shalt.err (!%p1047_p2)
}
   0x9   :  { %s1051_s21 = scalar_lea.vmem %s17_s13, 256  ;;  %p1056_p4 = scmp.lt.s32.totalorder %s17_s13, %s17_s13 }
   0xa   :  { %p1052_p3 = scmp.ne.s32.totalorder %s17_s13, %s1051_s21  ;;  %p1057_p5 = scmp.lt.s32.totalorder %s1051_s21, %s1051_s21 }
   0xc   :  { %p1058_p6 = por %p1057_p5, %p1056_p4 }
   0xe   :  { %p1059_p7 = pnand %p1058_p6, %p1052_p3 }
  0x10   :  { %1062 = shalt.err (!%p1059_p7)
}
  0x11   :  { %s1114_s22 = smov 128   ;;  %s1115_s23 = smov 8  }
  0x12   :  { %22 = dma.hbm_to_vmem [thread:$0]  %s1320_s0, 256, %s17_s13, [#allocation3], %s1114_s22, %s1114_s22, %s1115_s23  }
  0x13   :  { %s1116_s26 = smov [#allocation5]   ;;  %s1063_s30 = scalar_lea.hbm %s1321_s1, 6144 }
  0x14   :  { %s28_s27 = sshll.u32 %s1116_s26, 4  ;;  %p1064_p8 = scmp.ne.s32.totalorder %s1321_s1, %s1063_s30  ;;  %s29_s27 = int_to_ptr.vmem [resolvable:$true] %s28_s27 }
  0x15   :  { %p1067_p9 = scmp.lt.u32.totalorder %s1063_s30, %s1321_s1 }
  0x17   :  { %p1069_p10 = pnand %p1067_p9, %p1064_p8 }
  0x19   :  { %1072 = shalt.err (!%p1069_p10)
}
  0x1a   :  { %s1073_s8 = scalar_lea.vmem %s29_s27, 6144  ;;  %p1078_p12 = scmp.lt.s32.totalorder %s29_s27, %s29_s27 }
  0x1b   :  { %p1074_p11 = scmp.ne.s32.totalorder %s29_s27, %s1073_s8  ;;  %p1079_p13 = scmp.lt.s32.totalorder %s1073_s8, %s1073_s8 }
  0x1d   :  { %p1080_p0 = por %p1079_p13, %p1078_p12 }
  0x1f   :  { %p1081_p1 = pnand %p1080_p0, %p1074_p11 }
  0x21   :  { %1084 = shalt.err (!%p1081_p1)
}
  0x22   :  { %s1117_s0 = smov 64   ;;  %s1118_s9 = smov 4  }
  0x23   :  { %34 = dma.hbm_to_vmem [thread:$0]  %s1321_s1, 6144, %s29_s27, [#allocation6], %s1117_s0, %s1117_s0, %s1118_s9  }
  0x24   :  { %1107 = dma.done.wait [#allocation3], 256  }
  0x25   :  { %1108 = vsyncadd [#allocation3], 4294967040 }
  0x26   :  { %1109 = dma.done.wait [#allocation6], 6144  }
  0x27   :  { %1110 = vsyncadd [#allocation6], 4294961152  ;;  %v1119_v0 = vmov 0.0   ;;  %vm1120_vm0 = vmmov 0   ;;  %v989_v1 = vld [vmem:[#allocation5 + $0x40] sm:$0xff]   ;;  %v992_v4 = vld [vmem:[#allocation5 + $0x48] sm:$0xff]   ;;  %v47_v12 = vlaneseq }
  0x28   :  { %937 = vmatprep.subr.bf16.mxu1 %v1119_v0  ;;  %953 = vmatprep.mubr.msk.bf16.mxu1 %vm1120_vm0, %v1119_v0  ;;  %v990_v2 = vld [vmem:[#allocation5] sm:$0xff]   ;;  %v993_v5 = vld [vmem:[#allocation5 + $0x8] sm:$0xff]   ;;  %v995_v7 = vld [vmem:[#allocation5 + $0x50] sm:$0xff]   ;;  %vm1121_vm3 = vmmov 1   ;;  %s1122_s1 = smov 16   ;;  %s1123_s12 = smov 32  }
  0x29   :  { %875 = vmatprep.subr.bf16.mxu0 %v989_v1  ;;  %v991_v3 = vld [vmem:[#allocation5 + $0x80] sm:$0xff]   ;;  %v994_v6 = vld [vmem:[#allocation5 + $0x88] sm:$0xff]   ;;  %v996_v8 = vld [vmem:[#allocation5 + $0x10] sm:$0xff]   ;;  %v1181_v16 = vshrl.u32 %v47_v12, 7 }
  0x2a   :  { %876 = vmatpush3.bf16.msra.mxu0 %v990_v2  ;;  %938 = vmatpush3.bf16.msra.mxu1 %v991_v3  ;;  %v997_v9 = vld [vmem:[#allocation5 + $0x90] sm:$0xff]   ;;  %v998_v10 = vld [vmem:[#allocation5 + $0x58] sm:$0xff]   ;;  %v1001_v14 = vld [vmem:[#allocation5 + $0x60] sm:$0xff]  }
  0x2b   :  { %877 = vmatprep.subr.bf16.mxu0 %v992_v4  ;;  %939 = vmatprep.subr.bf16.mxu1 %v1119_v0  ;;  %v999_v11 = vld [vmem:[#allocation5 + $0x18] sm:$0xff]   ;;  %v1002_v15 = vld [vmem:[#allocation5 + $0x20] sm:$0xff]   ;;  %v1004_v18 = vld [vmem:[#allocation5 + $0x68] sm:$0xff]   ;;  %v49_v20 = vadd.s32 8, %v1181_v16  ;;  %vm873_vm1 = vcmp.ne.s32.totalorder %v1181_v16, 0  ;;  %vm102_vm5 = vcmp.lt.s32.totalorder %v1181_v16, 1 }
  0x2c   :  { %v1000_v13 = vld [vmem:[#allocation5 + $0x98] sm:$0xff]   ;;  %v1003_v17 = vld [vmem:[#allocation5 + $0xa0] sm:$0xff]   ;;  %v1005_v19 = vld [vmem:[#allocation5 + $0x28] sm:$0xff]   ;;  %vm111_vm6 = vcmp.lt.s32.totalorder %v1181_v16, 7 }
  0x2d   :  { %v1006_v21 = vld [vmem:[#allocation5 + $0xa8] sm:$0xff]   ;;  %v1007_v22 = vld [vmem:[#allocation5 + $0x70] sm:$0xff]   ;;  %vm874_vm2 = vcmp.ne.s32.totalorder %v49_v20, 15  ;;  %vm1188_vm4 = vmpackc.low %vm1121_vm3, %vm873_vm1 }
  0x2e   :  { %878 = vmatpush3.bf16.msra.mxu0 %v993_v5  ;;  %940 = vmatpush3.bf16.msra.mxu1 %v994_v6  ;;  %v1008_v23 = vld [vmem:[#allocation5 + $0x30] sm:$0xff]   ;;  %v1010_v26 = vld [vmem:[#allocation5 + $0x78] sm:$0xff]   ;;  %vm1205_vm7 = vmpackc.low %vm874_vm2, %vm1121_vm3 }
  0x2f   :  { %879 = vmatprep.subr.bf16.mxu0 %v995_v7  ;;  %941 = vmatprep.subr.bf16.mxu1 %v1119_v0  ;;  %v1009_v24 = vld [vmem:[#allocation5 + $0xb0] sm:$0xff]   ;;  %v1194_v28 = vld [vmem:[#allocation2 + $0x8] sm:$0xff] }
  0x30   :  { %v1192_v27 = vld [vmem:[#allocation2] sm:$0xff]  ;;  %v1011_v29 = vld [vmem:[#allocation5 + $0x38] sm:$0xff]   ;;  %v101_v31 = vrot.slane %v1194_v28, 7  ;;  %v110_v33 = vrot.slane %v1194_v28, 1 }
  0x31   :  { %v100_v30 = vrot.slane %v1192_v27, 7  ;;  %v109_v32 = vrot.slane %v1192_v27, 1  ;;  %v1012_v35 = vld [vmem:[#allocation5 + $0xb8] sm:$0xff]   ;;  %v117_v36 = vpack.c.bf16 %v1194_v28, %v1192_v27 }
  0x32   :  { %880 = vmatpush3.bf16.msra.mxu0 %v996_v8  ;;  %942 = vmatpush3.bf16.msra.mxu1 %v997_v9 }
  0x33   :  { %881 = vmatprep.subr.bf16.mxu0 %v998_v10  ;;  %943 = vmatprep.subr.bf16.mxu1 %v1119_v0  ;;  %v103_v37 = vsel %vm102_vm5, %v100_v30, %v101_v31  ;;  %v104_v38 = vsel %vm102_vm5, %v101_v31, %v100_v30  ;;  %v112_v39 = vsel %vm111_vm6, %v109_v32, %v110_v33  ;;  %v1016_v30 = vld [vmem:[#allocation5 + $0x108] sm:$0xff]  }
  0x34   :  { %v113_v40 = vsel %vm111_vm6, %v110_v33, %v109_v32  ;;  %295 = vmatprep.mubr.bf16.mxu0 %v117_v36  ;;  %v835_v41 = vpack.c.bf16 %v103_v37, %v104_v38  ;;  %v1017_v31 = vld [vmem:[#allocation5 + $0xc8] sm:$0xff]   ;;  %v1020_v36 = vld [vmem:[#allocation5 + $0xd0] sm:$0xff]   ;;  %v1022_v38 = vld [vmem:[#allocation5 + $0x118] sm:$0xff]  }
  0x35   :  { %v839_v42 = vpack.c.bf16 %v113_v40, %v112_v39  ;;  %v1018_v32 = vld [vmem:[#allocation5 + $0x148] sm:$0xff]   ;;  %v1021_v37 = vld [vmem:[#allocation5 + $0x150] sm:$0xff]   ;;  %v1023_v39 = vld [vmem:[#allocation5 + $0xd8] sm:$0xff]  }
  0x36   :  { %882 = vmatpush3.bf16.msra.mxu0 %v999_v11  ;;  %944 = vmatpush3.bf16.msra.mxu1 %v1000_v13  ;;  %v1024_v40 = vld [vmem:[#allocation5 + $0x158] sm:$0xff]  }
  0x37   :  { %883 = vmatprep.subr.bf16.mxu0 %v1001_v14  ;;  %945 = vmatprep.subr.bf16.mxu1 %v1119_v0 }
  0x3a   :  { %884 = vmatpush3.bf16.msra.mxu0 %v1002_v15  ;;  %946 = vmatpush3.bf16.msra.mxu1 %v1003_v17 }
  0x3b   :  { %885 = vmatprep.subr.bf16.mxu0 %v1004_v18  ;;  %947 = vmatprep.subr.bf16.mxu1 %v1119_v0 }
  0x3e   :  { %886 = vmatpush3.bf16.msra.mxu0 %v1005_v19  ;;  %948 = vmatpush3.bf16.msra.mxu1 %v1006_v21 }
  0x3f   :  { %887 = vmatprep.subr.bf16.mxu0 %v1007_v22  ;;  %949 = vmatprep.subr.bf16.mxu1 %v1119_v0 }
  0x42   :  { %888 = vmatpush3.bf16.msra.mxu0 %v1008_v23  ;;  %950 = vmatpush3.bf16.msra.mxu1 %v1009_v24  ;;  %v1013_v23 = vld [vmem:[#allocation5 + $0x100] sm:$0xff]  }
  0x43   :  { %889 = vmatprep.subr.bf16.mxu0 %v1010_v26  ;;  %951 = vmatprep.subr.bf16.mxu1 %v1119_v0  ;;  %v1014_v24 = vld [vmem:[#allocation5 + $0xc0] sm:$0xff]  }
  0x44   :  { %v1015_v26 = vld [vmem:[#allocation5 + $0x140] sm:$0xff]  }
  0x46   :  { %890 = vmatpush3.bf16.msra.mxu0 %v1011_v29  ;;  %952 = vmatpush3.bf16.msra.mxu1 %v1012_v35  ;;  %v1019_v35 = vld [vmem:[#allocation5 + $0x110] sm:$0xff]  }
  0x47   :  { %957 = vmatprep.subr.bf16.mxu1 %v1119_v0  ;;  %906 = vmatprep.subr.bf16.mxu0 %v1013_v23 }
  0x49   :  { %836 = vmatmul.mubr.msk.bf16.vlgmr.msra.gmra.mrb[0].mxu0 %vm1188_vm4, %v835_v41  ;;  %954 = vmatmul.mubr.msk.bf16.vlgmr.msra.gmra.mrb[0].mxu1 %vm1205_vm7, %v839_v42  ;;  %v1025_v41 = vld [vmem:[#allocation5 + $0x120] sm:$0xff]  }
  0x4a   :  { %973 = vmatprep.mubr.msk.bf16.mxu1 %vm1120_vm0, %v1119_v0  ;;  %907 = vmatpush3.bf16.msra.mxu0 %v1014_v24  ;;  %v1026_v42 = vld [vmem:[#allocation5 + $0xe0] sm:$0xff]  }
  0x4b   :  { %958 = vmatpush3.bf16.msra.mxu1 %v1015_v26  ;;  %908 = vmatprep.subr.bf16.mxu0 %v1016_v30 }
  0x4c   :  { %959 = vmatprep.subr.bf16.mxu1 %v1119_v0 }
  0x4e   :  { %909 = vmatpush3.bf16.msra.mxu0 %v1017_v31 }
  0x4f   :  { %960 = vmatpush3.bf16.msra.mxu1 %v1018_v32  ;;  %910 = vmatprep.subr.bf16.mxu0 %v1019_v35 }
  0x50   :  { %961 = vmatprep.subr.bf16.mxu1 %v1119_v0 }
  0x52   :  { %911 = vmatpush3.bf16.msra.mxu0 %v1020_v36 }
  0x53   :  { %962 = vmatpush3.bf16.msra.mxu1 %v1021_v37  ;;  %912 = vmatprep.subr.bf16.mxu0 %v1022_v38 }
  0x54   :  { %963 = vmatprep.subr.bf16.mxu1 %v1119_v0 }
  0x56   :  { %913 = vmatpush3.bf16.msra.mxu0 %v1023_v39 }
  0x57   :  { %964 = vmatpush3.bf16.msra.mxu1 %v1024_v40  ;;  %914 = vmatprep.subr.bf16.mxu0 %v1025_v41 }
  0x58   :  { %965 = vmatprep.subr.bf16.mxu1 %v1119_v0 }
  0x5a   :  { %915 = vmatpush3.bf16.msra.mxu0 %v1026_v42 }
 0x11c   :  { %v891_v43 = vpop.f32.mrb[0].mxu0  ;;  %v338_v44 = vpop.f32.mrb[0].mxu1 }
 0x11d   :  { %v892_v45 = vpop.f32.mrb[1].mxu0  ;;  %v955_v47 = vpop.f32.mrb[1].mxu1 }
 0x11e   :  { %v893_v46 = vadd.f32 %v892_v45, %v891_v43  ;;  %v894_v48 = vpop.f32.mrb[2].mxu0  ;;  %v341_v49 = vpop.f32.mrb[2].mxu1  ;;  %v1027_v43 = vld [vmem:[#allocation5 + $0x160] sm:$0xff]   ;;  %v1029_v45 = vld [vmem:[#allocation5 + $0xe8] sm:$0xff]   ;;  %v1031_v47 = vld [vmem:[#allocation5 + $0x130] sm:$0xff]  }
 0x11f   :  { %v895_v50 = vpop.f32.mrb[3].mxu0  ;;  %v956_v53 = vpop.f32.mrb[3].mxu1  ;;  %966 = vmatpush3.bf16.msra.mxu1 %v1027_v43 }
 0x120   :  { %v1227_v51 = vadd.f32 %v893_v46, %v338_v44  ;;  %v896_v52 = vadd.f32 %v895_v50, %v894_v48  ;;  %v1028_v44 = vld [vmem:[#allocation5 + $0x128] sm:$0xff]   ;;  %967 = vmatprep.subr.bf16.mxu1 %v1119_v0  ;;  %v1032_v48 = vld [vmem:[#allocation5 + $0xf0] sm:$0xff]   ;;  %v1034_v50 = vld [vmem:[#allocation5 + $0x138] sm:$0xff]  }
 0x121   :  { %v1030_v46 = vld [vmem:[#allocation5 + $0x168] sm:$0xff]   ;;  %916 = vmatprep.subr.bf16.mxu0 %v1028_v44  ;;  %v1036_v53 = vld [vmem:[#allocation5 + $0x178] sm:$0xff]  }
 0x122   :  { %v1229_v54 = vadd.f32 %v896_v52, %v341_v49  ;;  %v352_v55 = vmul.f32 %v1227_v51, %v1227_v51  ;;  %917 = vmatpush3.bf16.msra.mxu0 %v1029_v45  ;;  %v1033_v49 = vld [vmem:[#allocation5 + $0x170] sm:$0xff]   ;;  %v1035_v52 = vld [vmem:[#allocation5 + $0xf8] sm:$0xff]  }
 0x123   :  { %968 = vmatpush3.bf16.msra.mxu1 %v1030_v46  ;;  %918 = vmatprep.subr.bf16.mxu0 %v1031_v47 }
 0x124   :  { %v345_v56 = vadd.f32 %v1229_v54, %v1227_v51  ;;  %v353_v57 = vmul.f32 %v1229_v54, %v1229_v54  ;;  %969 = vmatprep.subr.bf16.mxu1 %v1119_v0 }
 0x126   :  { %v346_v58 = vrot.slane %v345_v56, 4  ;;  %v354_v59 = vadd.f32 %v353_v57, %v352_v55  ;;  %919 = vmatpush3.bf16.msra.mxu0 %v1032_v48 }
 0x127   :  { %970 = vmatpush3.bf16.msra.mxu1 %v1033_v49  ;;  %920 = vmatprep.subr.bf16.mxu0 %v1034_v50 }
 0x128   :  { %v347_v60 = vadd.f32 %v346_v58, %v345_v56  ;;  %v355_v61 = vrot.slane %v354_v59, 4  ;;  %971 = vmatprep.subr.bf16.mxu1 %v1119_v0 }
 0x12a   :  { %v348_v62 = vrot.slane %v347_v60, 2  ;;  %v356_v63 = vadd.f32 %v355_v61, %v354_v59  ;;  %921 = vmatpush3.bf16.msra.mxu0 %v1035_v52 }
 0x12b   :  { %972 = vmatpush3.bf16.msra.mxu1 %v1036_v53 }
 0x12c   :  { %v349_v1 = vadd.f32 %v348_v62, %v347_v60  ;;  %v357_v2 = vrot.slane %v356_v63, 2 }
 0x12e   :  { %v350_v3 = vrot.slane %v349_v1, 1  ;;  %v358_v4 = vadd.f32 %v357_v2, %v356_v63  ;;  %v1257_v2 = vld [vmem:[%s1322_s2] sm:$0xf]  ;;  %s1124_s2 = smov [#allocation7]  }
 0x12f   :  { %s796_s15 = sshll.u32 %s1124_s2, 4  ;;  %s797_s15 = int_to_ptr.vmem [resolvable:$true] %s796_s15 }
 0x130   :  { %v351_v5 = vadd.f32 %v350_v3, %v349_v1  ;;  %v359_v6 = vrot.slane %v358_v4, 1  ;;  %s1085_s16 = scalar_lea.vmem %s797_s15, 256  ;;  %p1090_p3 = scmp.lt.s32.totalorder %s797_s15, %s797_s15 }
 0x131   :  { %p1086_p2 = scmp.ne.s32.totalorder %s797_s15, %s1085_s16  ;;  %p1091_p4 = scmp.lt.s32.totalorder %s1085_s16, %s1085_s16 }
 0x132   :  { %361 = vrot.lane.b32.xlu0 %v351_v5, %s1118_s9  ;;  %v360_v7 = vadd.f32 %v359_v6, %v358_v4  ;;  %v406_v4 = vsub.s32 0, %v1181_v16 }
 0x133   :  { %p1092_p5 = por %p1091_p4, %p1090_p3 }
 0x135   :  { %p1093_p6 = pnand %p1092_p5, %p1086_p2 }
 0x136   :  { %364 = vrot.lane.b32.xlu0 %v360_v7, %s1118_s9 }
 0x1a4   :  { %v362_v8 = vpop.permute.xlu0 %361 }
 0x1a5   :  { %v363_v9 = vadd.f32 %v362_v8, %v351_v5  ;;  %v412_v8 = vsub.s32 1, %v1181_v16 }
 0x1a7   :  { %367 = vrot.lane.b32.xlu1 %v363_v9, %s1115_s23 }
 0x1a8   :  { %v365_v10 = vpop.permute.xlu0 %364 }
 0x1a9   :  { %v366_v11 = vadd.f32 %v365_v10, %v360_v7 }
 0x1ab   :  { %370 = vrot.lane.b32.xlu1 %v366_v11, %s1115_s23 }
 0x219   :  { %v368_v12 = vpop.permute.xlu1 %367 }
 0x21a   :  { %v369_v13 = vadd.f32 %v368_v12, %v363_v9 }
 0x21c   :  { %373 = vrot.lane.b32.xlu0 %v369_v13, %s1122_s1 }
 0x21d   :  { %v371_v14 = vpop.permute.xlu1 %370 }
 0x21e   :  { %v372_v15 = vadd.f32 %v371_v14, %v366_v11 }
 0x220   :  { %376 = vrot.lane.b32.xlu1 %v372_v15, %s1122_s1 }
 0x28e   :  { %v374_v17 = vpop.permute.xlu0 %373 }
 0x28f   :  { %v375_v18 = vadd.f32 %v374_v17, %v369_v13 }
 0x291   :  { %379 = vrot.lane.b32.xlu0 %v375_v18, %s1123_s12 }
 0x292   :  { %v377_v19 = vpop.permute.xlu1 %376 }
 0x293   :  { %v378_v20 = vadd.f32 %v377_v19, %v372_v15 }
 0x295   :  { %382 = vrot.lane.b32.xlu1 %v378_v20, %s1123_s12 }
 0x303   :  { %v380_v21 = vpop.permute.xlu0 %379 }
 0x304   :  { %v381_v22 = vadd.f32 %v380_v21, %v375_v18 }
 0x306   :  { %385 = vrot.lane.b32.xlu0 %v381_v22, %s1117_s0 }
 0x307   :  { %v383_v29 = vpop.permute.xlu1 %382 }
 0x308   :  { %v384_v33 = vadd.f32 %v383_v29, %v378_v20 }
 0x30a   :  { %388 = vrot.lane.b32.xlu1 %v384_v33, %s1117_s0 }
 0x378   :  { %v386_v55 = vpop.permute.xlu0 %385 }
 0x379   :  { %v387_v56 = vadd.f32 %v386_v55, %v381_v22 }
 0x37b   :  { %v391_v57 = vmul.f32 0.001953125, %v387_v56 }
 0x37c   :  { %v389_v58 = vpop.permute.xlu1 %388 }
 0x37d   :  { %v390_v59 = vadd.f32 %v389_v58, %v384_v33  ;;  %v393_v60 = vmul.f32 %v391_v57, %v391_v57 }
 0x37f   :  { %v392_v61 = vmul.f32 0.001953125, %v390_v59 }
 0x381   :  { %v394_v62 = vsub.f32 %v392_v61, %v393_v60 }
 0x383   :  { %v395_v63 = vmax.f32 %v394_v62, 0.0 }
 0x385   :  { %v396_v1 = vadd.f32 1e-05, %v395_v63 }
 0x387   :  { %1037 = vrsqrt.f32 %v396_v1 }
 0x391   :  { %v1038_v0 = vpop.eup %1037 }
 0x392   :  { %v398_v3 = vmul.f32 %v1038_v0, %v1257_v2 }
 0x394   :  { %v399_v5 = vmul.f32 %v398_v3, %v391_v57  ;;  %v407_v7 = vrot.slane %v398_v3, %v406_v4 }
 0x396   :  { %v401_v6 = vrot.slane %v399_v5, 7  ;;  %v408_v10 = vmul.f32 %v407_v7, %v1227_v51  ;;  %v409_v11 = vmul.f32 %v407_v7, %v1229_v54 }
 0x398   :  { %v403_v9 = vsub.f32 %v1257_v2, %v401_v6 }
 0x39a   :  { %v413_v12 = vrot.slane %v403_v9, %v412_v8 }
 0x39c   :  { %v414_v13 = vadd.f32 %v413_v12, %v408_v10  ;;  %v415_v14 = vadd.f32 %v413_v12, %v409_v11 }
 0x39e   :  { %v416_v15 = vmax.f32 %v414_v13, 0.0  ;;  %v417_v17 = vmax.f32 %v415_v14, 0.0 }
 0x3a0   :  { %v467_v18 = vrot.slane %v416_v15, 7  ;;  %v468_v19 = vrot.slane %v417_v17, 7  ;;  %v473_v20 = vrot.slane %v416_v15, 1  ;;  %v474_v21 = vrot.slane %v417_v17, 1 }
 0x3a1   :  { %v480_v22 = vpack.c.bf16 %v417_v17, %v416_v15 }
 0x3a2   :  { %v469_v23 = vsel %vm102_vm5, %v467_v18, %v468_v19  ;;  %v470_v24 = vsel %vm102_vm5, %v468_v19, %v467_v18  ;;  %v475_v51 = vsel %vm111_vm6, %v473_v20, %v474_v21  ;;  %v476_v54 = vsel %vm111_vm6, %v474_v21, %v473_v20 }
 0x3a3   :  { %658 = vmatprep.mubr.bf16.mxu0 %v480_v22  ;;  %v867_v26 = vpack.c.bf16 %v469_v23, %v470_v24  ;;  %v871_v29 = vpack.c.bf16 %v476_v54, %v475_v51  ;;  %v775_v54 = vsub.s32 2, %v1181_v16 }
 0x3a5   :  { %868 = vmatmul.mubr.msk.bf16.vlgmr.msra.gmra.mrb[4].mxu0 %vm1188_vm4, %v867_v26  ;;  %974 = vmatmul.mubr.msk.bf16.vlgmr.msra.gmra.mrb[4].mxu1 %vm1205_vm7, %v871_v29 }
 0x478   :  { %v922_v30 = vpop.f32.mrb[4].mxu0  ;;  %v701_v31 = vpop.f32.mrb[4].mxu1 }
 0x479   :  { %v923_v32 = vpop.f32.mrb[5].mxu0  ;;  %v975_v33 = vpop.f32.mrb[5].mxu1 }
 0x47a   :  { %v924_v35 = vadd.f32 %v923_v32, %v922_v30  ;;  %v925_v36 = vpop.f32.mrb[6].mxu0  ;;  %v704_v37 = vpop.f32.mrb[6].mxu1  ;;  %v781_v32 = vsub.s32 3, %v1181_v16 }
 0x47b   :  { %v926_v38 = vpop.f32.mrb[7].mxu0  ;;  %v976_v39 = vpop.f32.mrb[7].mxu1 }
 0x47c   :  { %v1277_v40 = vadd.f32 %v924_v35, %v701_v31  ;;  %v927_v41 = vadd.f32 %v926_v38, %v925_v36 }
 0x47e   :  { %v1279_v42 = vadd.f32 %v927_v41, %v704_v37  ;;  %v715_v25 = vmul.f32 %v1277_v40, %v1277_v40 }
 0x480   :  { %v708_v34 = vadd.f32 %v1279_v42, %v1277_v40  ;;  %v716_v43 = vmul.f32 %v1279_v42, %v1279_v42 }
 0x482   :  { %v709_v44 = vrot.slane %v708_v34, 4  ;;  %v717_v45 = vadd.f32 %v716_v43, %v715_v25 }
 0x484   :  { %v710_v46 = vadd.f32 %v709_v44, %v708_v34  ;;  %v718_v47 = vrot.slane %v717_v45, 4 }
 0x486   :  { %v711_v48 = vrot.slane %v710_v46, 2  ;;  %v719_v49 = vadd.f32 %v718_v47, %v717_v45 }
 0x488   :  { %v712_v50 = vadd.f32 %v711_v48, %v710_v46  ;;  %v720_v52 = vrot.slane %v719_v49, 2 }
 0x48a   :  { %v713_v53 = vrot.slane %v712_v50, 1  ;;  %v721_v55 = vadd.f32 %v720_v52, %v719_v49 }
 0x48c   :  { %v714_v56 = vadd.f32 %v713_v53, %v712_v50  ;;  %v722_v57 = vrot.slane %v721_v55, 1 }
 0x48e   :  { %724 = vrot.lane.b32.xlu0 %v714_v56, %s1118_s9  ;;  %v723_v58 = vadd.f32 %v722_v57, %v721_v55 }
 0x490   :  { %727 = vrot.lane.b32.xlu1 %v723_v58, %s1118_s9 }
 0x500   :  { %v725_v59 = vpop.permute.xlu0 %724 }
 0x501   :  { %v726_v60 = vadd.f32 %v725_v59, %v714_v56 }
 0x502   :  { %v728_v61 = vpop.permute.xlu1 %727 }
 0x503   :  { %v729_v62 = vadd.f32 %v728_v61, %v723_v58  ;;  %730 = vrot.lane.b32.xlu0 %v726_v60, %s1115_s23 }
 0x505   :  { %733 = vrot.lane.b32.xlu1 %v729_v62, %s1115_s23 }
 0x575   :  { %v731_v63 = vpop.permute.xlu0 %730 }
 0x576   :  { %v732_v1 = vadd.f32 %v731_v63, %v726_v60 }
 0x577   :  { %v734_v0 = vpop.permute.xlu1 %733 }
 0x578   :  { %v735_v3 = vadd.f32 %v734_v0, %v729_v62  ;;  %736 = vrot.lane.b32.xlu0 %v732_v1, %s1122_s1 }
 0x57a   :  { %739 = vrot.lane.b32.xlu1 %v735_v3, %s1122_s1 }
 0x5ea   :  { %v737_v4 = vpop.permute.xlu0 %736 }
 0x5eb   :  { %v738_v5 = vadd.f32 %v737_v4, %v732_v1 }
 0x5ec   :  { %v740_v6 = vpop.permute.xlu1 %739 }
 0x5ed   :  { %v741_v7 = vadd.f32 %v740_v6, %v735_v3  ;;  %742 = vrot.lane.b32.xlu0 %v738_v5, %s1123_s12 }
 0x5ef   :  { %745 = vrot.lane.b32.xlu1 %v741_v7, %s1123_s12 }
 0x65f   :  { %v743_v8 = vpop.permute.xlu0 %742 }
 0x660   :  { %v744_v9 = vadd.f32 %v743_v8, %v738_v5 }
 0x661   :  { %v746_v10 = vpop.permute.xlu1 %745 }
 0x662   :  { %v747_v11 = vadd.f32 %v746_v10, %v741_v7  ;;  %748 = vrot.lane.b32.xlu0 %v744_v9, %s1117_s0 }
 0x664   :  { %751 = vrot.lane.b32.xlu1 %v747_v11, %s1117_s0 }
 0x6d4   :  { %v749_v12 = vpop.permute.xlu0 %748 }
 0x6d5   :  { %v750_v13 = vadd.f32 %v749_v12, %v744_v9 }
 0x6d6   :  { %v752_v14 = vpop.permute.xlu1 %751 }
 0x6d7   :  { %v754_v15 = vmul.f32 0.001953125, %v750_v13  ;;  %v753_v17 = vadd.f32 %v752_v14, %v747_v11 }
 0x6d9   :  { %v756_v18 = vmul.f32 %v754_v15, %v754_v15  ;;  %v755_v19 = vmul.f32 0.001953125, %v753_v17 }
 0x6db   :  { %v757_v20 = vsub.f32 %v755_v19, %v756_v18 }
 0x6dd   :  { %v758_v21 = vmax.f32 %v757_v20, 0.0 }
 0x6df   :  { %v759_v22 = vadd.f32 1e-05, %v758_v21 }
 0x6e1   :  { %1039 = vrsqrt.f32 %v759_v22 }
 0x6eb   :  { %v1040_v23 = vpop.eup %1039 }
 0x6ec   :  { %v762_v24 = vrot.slane %v1040_v23, 6 }
 0x6ee   :  { %v764_v51 = vmul.f32 %v762_v24, %v1257_v2 }
 0x6f0   :  { %v766_v26 = vrot.slane %v764_v51, 2  ;;  %v776_v31 = vrot.slane %v764_v51, %v775_v54 }
 0x6f2   :  { %v768_v29 = vmul.f32 %v766_v26, %v754_v15  ;;  %v777_v35 = vmul.f32 %v776_v31, %v1277_v40  ;;  %v778_v36 = vmul.f32 %v776_v31, %v1279_v42 }
 0x6f4   :  { %v770_v30 = vrot.slane %v768_v29, 5 }
 0x6f6   :  { %v772_v33 = vsub.f32 %v1257_v2, %v770_v30 }
 0x6f8   :  { %v782_v37 = vrot.slane %v772_v33, %v781_v32 }
 0x6fa   :  { %v783_v38 = vadd.f32 %v782_v37, %v777_v35  ;;  %v784_v39 = vadd.f32 %v782_v37, %v778_v36 }
 0x6fc   :  { %v785_v41 = vadd.f32 %v783_v38, %v1192_v27  ;;  %v786_v25 = vadd.f32 %v784_v39, %v1194_v28 }
 0x6fe   :  { %v787_v34 = vmax.f32 %v785_v41, 0.0  ;;  %v788_v43 = vmax.f32 %v786_v25, 0.0 }
 0x700   :  { %789 = vst [vmem:[#allocation7] sm:$0xff] %v787_v34  ;;  %790 = vst [vmem:[#allocation7 + $0x8] sm:$0xff] %v788_v43 }
 0x701   :  { %1096 = shalt.err (!%p1093_p6)
}
 0x702   :  { %s1097_s19 = scalar_lea.hbm %s1323_s3, 256 }
 0x703   :  { %p1098_p7 = scmp.ne.s32.totalorder %s1323_s3, %s1097_s19  ;;  %p1101_p8 = scmp.lt.u32.totalorder %s1097_s19, %s1323_s3 }
 0x705   :  { %p1103_p9 = pnand %p1101_p8, %p1098_p7 }
 0x707   :  { %1106 = shalt.err (!%p1103_p9)
}
 0x708   :  { %802 = dma.vmem_to_hbm [thread:$0]  %s797_s15, 256, %s1323_s3, [#allocation4], %s1114_s22, %s1114_s22, %s1115_s23  }
 0x709   :  { %1111 = dma.done.wait [#allocation4], 256  }
 0x70a   :  { %1112 = vsyncadd [#allocation4], 4294967040 }
 0x70b   :  { %806 = vsyncpa [#allocation3], 1 }
 0x70c   :  { %807 = vsyncpa [#allocation6], 1 }
 0x70d   :  { %808 = vsyncpa [#allocation4], 1 }

</bundles_post_ra>
